<compile_context>
chip_gen: v7x
topology: tpu7x:2x2x1
jax: 0.10.0
libtpu: 0.0.40
codegen_flags: <defaults>
</compile_context>

<pallas_src>
import functools

import numpy as np
import jax
import jax.numpy as jnp
from jax.experimental import pallas as pl
from jax.experimental.pallas import tpu as pltpu


def _make_ddim_schedule(T=1000, t_star=100, n_steps=4):
    """Linear-beta DDPM schedule + fully folded DDIM (eta=0) coefficients.

    Returns:
      a0, b0, c0: x_t = a0 * x + b0 + c0 * noise  (input rescale + noising)
      steps:      [(alpha_i, beta_i)] with x_t <- alpha_i * x_t + beta_i * eps
    """
    betas = np.linspace(1e-4, 0.02, T, dtype=np.float64)
    alphas = 1.0 - betas
    abar = np.cumprod(alphas)
    sab = np.sqrt(abar[t_star - 1])
    s1mab = np.sqrt(1.0 - abar[t_star - 1])
    # fold (x - 0.5) * 2 into the forward-diffusion affine
    a0, b0, c0 = float(2.0 * sab), float(-sab), float(s1mab)

    ts = np.linspace(t_star - 1, 0, n_steps + 1).round().astype(int)
    steps = []
    for i in range(n_steps):
        a_t = abar[ts[i]]
        a_p = abar[ts[i + 1]] if i < n_steps - 1 else 1.0
        sa_t, s1a_t = np.sqrt(a_t), np.sqrt(1.0 - a_t)
        sa_p, s1a_p = np.sqrt(a_p), np.sqrt(max(1.0 - a_p, 0.0))
        alpha = sa_p / sa_t
        beta = s1a_p - sa_p * s1a_t / sa_t
        steps.append((float(alpha), float(beta)))
    return a0, b0, c0, steps


def _purify_kernel(x_ref, noise_ref, w_ref, o_ref, *, a0, b0, c0, steps):
    # x_ref / noise_ref / o_ref: (1, C, TP) tiles.  w_ref: full (C, C) weight.
    x = x_ref[0].astype(jnp.float32)          # (C, TP)
    nz = noise_ref[0].astype(jnp.float32)     # (C, TP)
    w = w_ref[...].astype(jnp.float32)        # (C, C)
    C = x.shape[0]

    # (x - 0.5) * 2 rescale + forward diffusion to t*, folded into one affine.
    x_t = a0 * x + c0 * nz + b0

    # Deterministic DDIM reverse steps (statically unrolled, n_steps small).
    # Synthetic eps-predictor = 1x1 conv: eps = W @ x_t, realized as C
    # broadcast outer-product FMAs on the VPU (K=C is far too small for MXU).
    for (alpha, beta) in steps:
        eps = w[:, 0:1] * x_t[0:1, :]
        for k in range(1, C):
            eps = eps + w[:, k:k + 1] * x_t[k:k + 1, :]
        x_t = alpha * x_t + beta * eps

    # (x_re + 1) * 0.5, folded.
    o_ref[0] = (0.5 * x_t + 0.5).astype(o_ref.dtype)


def _pick_pixel_tile(hw, c, budget_bytes=8 * 1024 * 1024):
    """Largest 128-multiple divisor of `hw` whose double-buffered working set
    (x, noise, out tiles, f32) stays under `budget_bytes` (v7x-safe)."""
    assert hw % 128 == 0, "H*W must be a multiple of 128 lanes"
    per_px = 3 * 2 * c * 4          # 3 arrays x 2 buffers x C rows x f32
    cap = max(128, (budget_bytes // per_px) // 128 * 128)
    tp = 128
    for cand in range(128, min(hw, cap) + 1, 128):
        if hw % cand == 0:
            tp = cand
    return tp


def sde_diffusion_forward(x_nchw, noise_nchw, w, *, t_star=100, n_steps=4):
    """Pallas implementation of SDE_Diffusion.forward (purification path)."""
    N, C, H, W_ = x_nchw.shape
    HW = H * W_
    # Free reshapes only: NCHW -> (N, C, H*W).  Pixels on lanes, channels on
    # sublanes; no HBM-visible transpose on either side of the kernel.
    x3 = x_nchw.reshape(N, C, HW)
    n3 = noise_nchw.reshape(N, C, HW)

    a0, b0, c0, steps = _make_ddim_schedule(t_star=t_star, n_steps=n_steps)
    TP = _pick_pixel_tile(HW, C)

    kernel = functools.partial(_purify_kernel, a0=a0, b0=b0, c0=c0, steps=steps)

    # advisory cost hint: mem-bound elementwise + tiny channel mixes
    flops = int(N * HW * C * (n_steps * (2 * C + 4) + 5))
    bytes_accessed = int(3 * N * C * HW * x_nchw.dtype.itemsize + C * C * 4)

    out3 = pl.pallas_call(
        kernel,
        out_shape=jax.ShapeDtypeStruct((N, C, HW), x_nchw.dtype),
        grid_spec=pltpu.PrefetchScalarGridSpec(
            num_scalar_prefetch=0,
            grid=(N, HW // TP),
            in_specs=[
                pl.BlockSpec((1, C, TP), lambda n, i: (n, 0, i)),   # x
                pl.BlockSpec((1, C, TP), lambda n, i: (n, 0, i)),   # noise
                pl.BlockSpec((C, C), lambda n, i: (0, 0)),          # eps-net W
            ],
            out_specs=pl.BlockSpec((1, C, TP), lambda n, i: (n, 0, i)),
        ),
        compiler_params=pltpu.CompilerParams(
            dimension_semantics=("parallel", "parallel"),
            vmem_limit_bytes=32 * 1024 * 1024),
        cost_estimate=pl.CostEstimate(
            flops=flops, transcendentals=0, bytes_accessed=bytes_accessed),
    )(x3, n3, w)

    # (N, C, H*W) -> NCHW (free reshape, no transpose)
    return out3.reshape(N, C, H, W_)


if __name__ == "__main__":
    key = jax.random.PRNGKey(0)
    k_x, k_n, k_w = jax.random.split(key, 3)

    N, C, H, W_ = 2, 4, 16, 16
    # images in [0, 1], as expected by the module's forward
    x = jax.random.uniform(k_x, (N, C, H, W_), dtype=jnp.float32)
    # purification noise drawn deterministically on the host (kept as an input
    # for bit-parity with an externally drawn noise tensor)
    noise = jax.random.normal(k_n, (N, C, H, W_), dtype=jnp.float32)
    # deterministic synthetic 1x1-conv epsilon-predictor weight (C, C)
    w = (0.1 * jnp.eye(C, dtype=jnp.float32)
         + 0.01 * jax.random.normal(k_w, (C, C), dtype=jnp.float32))

    out = sde_diffusion_forward(x, noise, w)
    out = jax.block_until_ready(out)

    # pure-JAX reference (same folded algebra, pure f32 elementwise)
    a0, b0, c0, steps = _make_ddim_schedule()
    xr = a0 * x + b0 + c0 * noise
    for (alpha, beta) in steps:
        eps = jnp.sum(w[None, :, :, None, None] * xr[:, None, :, :, :], axis=2)
        xr = alpha * xr + beta * eps
    ref = 0.5 * xr + 0.5

    assert out.shape == (N, C, H, W_) and out.dtype == jnp.float32
    assert bool(jnp.all(jnp.isfinite(out)))
    assert bool(jnp.allclose(out, ref, atol=1e-5, rtol=1e-5))
    print("KERNEL_OK")
</pallas_src>

<mosaic_0001>
module attributes {stable_mosaic.version = 11 : i64} {
  func.func @_purify_kernel(%arg0: i32, %arg1: i32, %arg2: memref<1x4x256xf32, #tpu.memory_space<vmem>>, %arg3: memref<1x4x256xf32, #tpu.memory_space<vmem>>, %arg4: memref<4x4xf32, #tpu.memory_space<vmem>>, %arg5: memref<1x4x256xf32, #tpu.memory_space<vmem>>) attributes {dimension_semantics = [#tpu.dimension_semantics<parallel>, #tpu.dimension_semantics<parallel>], iteration_bounds = array<i64: 2, 1>, scalar_prefetch = 0 : i64, scratch_operands = 0 : i64, tpu.core_type = #tpu.core_type<tc>, window_params = [{transform_indices = @transform_0, window_bounds = array<i64: 1, 4, 256>}, {transform_indices = @transform_1, window_bounds = array<i64: 1, 4, 256>}, {pipeline_mode = #tpu.pipeline_mode<synchronous>, transform_indices = @transform_2, window_bounds = array<i64: 4, 4>}, {transform_indices = @transform_3, window_bounds = array<i64: 1, 4, 256>}]} {
    %c0 = arith.constant 0 : index
    %c0_0 = arith.constant 0 : index
    %c0_1 = arith.constant 0 : index
    %0 = vector.load %arg2[%c0, %c0_0, %c0_1] : memref<1x4x256xf32, #tpu.memory_space<vmem>>, vector<1x4x256xf32>
    %1 = vector.shape_cast %0 : vector<1x4x256xf32> to vector<4x256xf32>
    %c0_2 = arith.constant 0 : index
    %c0_3 = arith.constant 0 : index
    %c0_4 = arith.constant 0 : index
    %2 = vector.load %arg3[%c0_2, %c0_3, %c0_4] : memref<1x4x256xf32, #tpu.memory_space<vmem>>, vector<1x4x256xf32>
    %3 = vector.shape_cast %2 : vector<1x4x256xf32> to vector<4x256xf32>
    %c0_5 = arith.constant 0 : index
    %c0_6 = arith.constant 0 : index
    %4 = vector.load %arg4[%c0_5, %c0_6] : memref<4x4xf32, #tpu.memory_space<vmem>>, vector<4x4xf32>
    %cst = arith.constant 1.89422083 : f32
    %5 = vector.broadcast %cst : f32 to vector<4x256xf32>
    %6 = arith.mulf %5, %1 : vector<4x256xf32>
    %cst_7 = arith.constant 0.320907861 : f32
    %7 = vector.broadcast %cst_7 : f32 to vector<4x256xf32>
    %8 = arith.mulf %7, %3 : vector<4x256xf32>
    %9 = arith.addf %6, %8 : vector<4x256xf32>
    %cst_8 = arith.constant -0.947110414 : f32
    %10 = vector.broadcast %cst_8 : f32 to vector<4x256xf32>
    %11 = arith.addf %9, %10 : vector<4x256xf32>
    %12 = vector.extract_strided_slice %4 {offsets = [0, 0], sizes = [4, 1], strides = [1, 1]} : vector<4x4xf32> to vector<4x1xf32>
    %13 = vector.extract_strided_slice %11 {offsets = [0, 0], sizes = [1, 256], strides = [1, 1]} : vector<4x256xf32> to vector<1x256xf32>
    %14 = vector.broadcast %12 : vector<4x1xf32> to vector<4x256xf32>
    %15 = vector.broadcast %13 : vector<1x256xf32> to vector<4x256xf32>
    %16 = arith.mulf %14, %15 : vector<4x256xf32>
    %17 = vector.extract_strided_slice %4 {offsets = [0, 1], sizes = [4, 1], strides = [1, 1]} : vector<4x4xf32> to vector<4x1xf32>
    %18 = vector.extract_strided_slice %11 {offsets = [1, 0], sizes = [1, 256], strides = [1, 1]} : vector<4x256xf32> to vector<1x256xf32>
    %19 = vector.broadcast %17 : vector<4x1xf32> to vector<4x256xf32>
    %20 = vector.broadcast %18 : vector<1x256xf32> to vector<4x256xf32>
    %21 = arith.mulf %19, %20 : vector<4x256xf32>
    %22 = arith.addf %16, %21 : vector<4x256xf32>
    %23 = vector.extract_strided_slice %4 {offsets = [0, 2], sizes = [4, 1], strides = [1, 1]} : vector<4x4xf32> to vector<4x1xf32>
    %24 = vector.extract_strided_slice %11 {offsets = [2, 0], sizes = [1, 256], strides = [1, 1]} : vector<4x256xf32> to vector<1x256xf32>
    %25 = vector.broadcast %23 : vector<4x1xf32> to vector<4x256xf32>
    %26 = vector.broadcast %24 : vector<1x256xf32> to vector<4x256xf32>
    %27 = arith.mulf %25, %26 : vector<4x256xf32>
    %28 = arith.addf %22, %27 : vector<4x256xf32>
    %29 = vector.extract_strided_slice %4 {offsets = [0, 3], sizes = [4, 1], strides = [1, 1]} : vector<4x4xf32> to vector<4x1xf32>
    %30 = vector.extract_strided_slice %11 {offsets = [3, 0], sizes = [1, 256], strides = [1, 1]} : vector<4x256xf32> to vector<1x256xf32>
    %31 = vector.broadcast %29 : vector<4x1xf32> to vector<4x256xf32>
    %32 = vector.broadcast %30 : vector<1x256xf32> to vector<4x256xf32>
    %33 = arith.mulf %31, %32 : vector<4x256xf32>
    %34 = arith.addf %28, %33 : vector<4x256xf32>
    %cst_9 = arith.constant 1.02319908 : f32
    %35 = vector.broadcast %cst_9 : f32 to vector<4x256xf32>
    %36 = arith.mulf %35, %11 : vector<4x256xf32>
    %cst_10 = arith.constant -0.0816157236 : f32
    %37 = vector.broadcast %cst_10 : f32 to vector<4x256xf32>
    %38 = arith.mulf %37, %34 : vector<4x256xf32>
    %39 = arith.addf %36, %38 : vector<4x256xf32>
    %40 = vector.extract_strided_slice %4 {offsets = [0, 0], sizes = [4, 1], strides = [1, 1]} : vector<4x4xf32> to vector<4x1xf32>
    %41 = vector.extract_strided_slice %39 {offsets = [0, 0], sizes = [1, 256], strides = [1, 1]} : vector<4x256xf32> to vector<1x256xf32>
    %42 = vector.broadcast %40 : vector<4x1xf32> to vector<4x256xf32>
    %43 = vector.broadcast %41 : vector<1x256xf32> to vector<4x256xf32>
    %44 = arith.mulf %42, %43 : vector<4x256xf32>
    %45 = vector.extract_strided_slice %4 {offsets = [0, 1], sizes = [4, 1], strides = [1, 1]} : vector<4x4xf32> to vector<4x1xf32>
    %46 = vector.extract_strided_slice %39 {offsets = [1, 0], sizes = [1, 256], strides = [1, 1]} : vector<4x256xf32> to vector<1x256xf32>
    %47 = vector.broadcast %45 : vector<4x1xf32> to vector<4x256xf32>
    %48 = vector.broadcast %46 : vector<1x256xf32> to vector<4x256xf32>
    %49 = arith.mulf %47, %48 : vector<4x256xf32>
    %50 = arith.addf %44, %49 : vector<4x256xf32>
    %51 = vector.extract_strided_slice %4 {offsets = [0, 2], sizes = [4, 1], strides = [1, 1]} : vector<4x4xf32> to vector<4x1xf32>
    %52 = vector.extract_strided_slice %39 {offsets = [2, 0], sizes = [1, 256], strides = [1, 1]} : vector<4x256xf32> to vector<1x256xf32>
    %53 = vector.broadcast %51 : vector<4x1xf32> to vector<4x256xf32>
    %54 = vector.broadcast %52 : vector<1x256xf32> to vector<4x256xf32>
    %55 = arith.mulf %53, %54 : vector<4x256xf32>
    %56 = arith.addf %50, %55 : vector<4x256xf32>
    %57 = vector.extract_strided_slice %4 {offsets = [0, 3], sizes = [4, 1], strides = [1, 1]} : vector<4x4xf32> to vector<4x1xf32>
    %58 = vector.extract_strided_slice %39 {offsets = [3, 0], sizes = [1, 256], strides = [1, 1]} : vector<4x256xf32> to vector<1x256xf32>
    %59 = vector.broadcast %57 : vector<4x1xf32> to vector<4x256xf32>
    %60 = vector.broadcast %58 : vector<1x256xf32> to vector<4x256xf32>
    %61 = arith.mulf %59, %60 : vector<4x256xf32>
    %62 = arith.addf %56, %61 : vector<4x256xf32>
    %cst_11 = arith.constant 1.01628208 : f32
    %63 = vector.broadcast %cst_11 : f32 to vector<4x256xf32>
    %64 = arith.mulf %63, %39 : vector<4x256xf32>
    %cst_12 = arith.constant -0.0774092301 : f32
    %65 = vector.broadcast %cst_12 : f32 to vector<4x256xf32>
    %66 = arith.mulf %65, %62 : vector<4x256xf32>
    %67 = arith.addf %64, %66 : vector<4x256xf32>
    %68 = vector.extract_strided_slice %4 {offsets = [0, 0], sizes = [4, 1], strides = [1, 1]} : vector<4x4xf32> to vector<4x1xf32>
    %69 = vector.extract_strided_slice %67 {offsets = [0, 0], sizes = [1, 256], strides = [1, 1]} : vector<4x256xf32> to vector<1x256xf32>
    %70 = vector.broadcast %68 : vector<4x1xf32> to vector<4x256xf32>
    %71 = vector.broadcast %69 : vector<1x256xf32> to vector<4x256xf32>
    %72 = arith.mulf %70, %71 : vector<4x256xf32>
    %73 = vector.extract_strided_slice %4 {offsets = [0, 1], sizes = [4, 1], strides = [1, 1]} : vector<4x4xf32> to vector<4x1xf32>
    %74 = vector.extract_strided_slice %67 {offsets = [1, 0], sizes = [1, 256], strides = [1, 1]} : vector<4x256xf32> to vector<1x256xf32>
    %75 = vector.broadcast %73 : vector<4x1xf32> to vector<4x256xf32>
    %76 = vector.broadcast %74 : vector<1x256xf32> to vector<4x256xf32>
    %77 = arith.mulf %75, %76 : vector<4x256xf32>
    %78 = arith.addf %72, %77 : vector<4x256xf32>
    %79 = vector.extract_strided_slice %4 {offsets = [0, 2], sizes = [4, 1], strides = [1, 1]} : vector<4x4xf32> to vector<4x1xf32>
    %80 = vector.extract_strided_slice %67 {offsets = [2, 0], sizes = [1, 256], strides = [1, 1]} : vector<4x256xf32> to vector<1x256xf32>
    %81 = vector.broadcast %79 : vector<4x1xf32> to vector<4x256xf32>
    %82 = vector.broadcast %80 : vector<1x256xf32> to vector<4x256xf32>
    %83 = arith.mulf %81, %82 : vector<4x256xf32>
    %84 = arith.addf %78, %83 : vector<4x256xf32>
    %85 = vector.extract_strided_slice %4 {offsets = [0, 3], sizes = [4, 1], strides = [1, 1]} : vector<4x4xf32> to vector<4x1xf32>
    %86 = vector.extract_strided_slice %67 {offsets = [3, 0], sizes = [1, 256], strides = [1, 1]} : vector<4x256xf32> to vector<1x256xf32>
    %87 = vector.broadcast %85 : vector<4x1xf32> to vector<4x256xf32>
    %88 = vector.broadcast %86 : vector<1x256xf32> to vector<4x256xf32>
    %89 = arith.mulf %87, %88 : vector<4x256xf32>
    %90 = arith.addf %84, %89 : vector<4x256xf32>
    %cst_13 = arith.constant 1.01077425 : f32
    %91 = vector.broadcast %cst_13 : f32 to vector<4x256xf32>
    %92 = arith.mulf %91, %67 : vector<4x256xf32>
    %cst_14 = arith.constant -0.0801612288 : f32
    %93 = vector.broadcast %cst_14 : f32 to vector<4x256xf32>
    %94 = arith.mulf %93, %90 : vector<4x256xf32>
    %95 = arith.addf %92, %94 : vector<4x256xf32>
    %96 = vector.extract_strided_slice %4 {offsets = [0, 0], sizes = [4, 1], strides = [1, 1]} : vector<4x4xf32> to vector<4x1xf32>
    %97 = vector.extract_strided_slice %95 {offsets = [0, 0], sizes = [1, 256], strides = [1, 1]} : vector<4x256xf32> to vector<1x256xf32>
    %98 = vector.broadcast %96 : vector<4x1xf32> to vector<4x256xf32>
    %99 = vector.broadcast %97 : vector<1x256xf32> to vector<4x256xf32>
    %100 = arith.mulf %98, %99 : vector<4x256xf32>
    %101 = vector.extract_strided_slice %4 {offsets = [0, 1], sizes = [4, 1], strides = [1, 1]} : vector<4x4xf32> to vector<4x1xf32>
    %102 = vector.extract_strided_slice %95 {offsets = [1, 0], sizes = [1, 256], strides = [1, 1]} : vector<4x256xf32> to vector<1x256xf32>
    %103 = vector.broadcast %101 : vector<4x1xf32> to vector<4x256xf32>
    %104 = vector.broadcast %102 : vector<1x256xf32> to vector<4x256xf32>
    %105 = arith.mulf %103, %104 : vector<4x256xf32>
    %106 = arith.addf %100, %105 : vector<4x256xf32>
    %107 = vector.extract_strided_slice %4 {offsets = [0, 2], sizes = [4, 1], strides = [1, 1]} : vector<4x4xf32> to vector<4x1xf32>
    %108 = vector.extract_strided_slice %95 {offsets = [2, 0], sizes = [1, 256], strides = [1, 1]} : vector<4x256xf32> to vector<1x256xf32>
    %109 = vector.broadcast %107 : vector<4x1xf32> to vector<4x256xf32>
    %110 = vector.broadcast %108 : vector<1x256xf32> to vector<4x256xf32>
    %111 = arith.mulf %109, %110 : vector<4x256xf32>
    %112 = arith.addf %106, %111 : vector<4x256xf32>
    %113 = vector.extract_strided_slice %4 {offsets = [0, 3], sizes = [4, 1], strides = [1, 1]} : vector<4x4xf32> to vector<4x1xf32>
    %114 = vector.extract_strided_slice %95 {offsets = [3, 0], sizes = [1, 256], strides = [1, 1]} : vector<4x256xf32> to vector<1x256xf32>
    %115 = vector.broadcast %113 : vector<4x1xf32> to vector<4x256xf32>
    %116 = vector.broadcast %114 : vector<1x256xf32> to vector<4x256xf32>
    %117 = arith.mulf %115, %116 : vector<4x256xf32>
    %118 = arith.addf %112, %117 : vector<4x256xf32>
    %cst_15 = arith.constant 1.00454819 : f32
    %119 = vector.broadcast %cst_15 : f32 to vector<4x256xf32>
    %120 = arith.mulf %119, %95 : vector<4x256xf32>
    %cst_16 = arith.constant -0.0954838097 : f32
    %121 = vector.broadcast %cst_16 : f32 to vector<4x256xf32>
    %122 = arith.mulf %121, %118 : vector<4x256xf32>
    %123 = arith.addf %120, %122 : vector<4x256xf32>
    %cst_17 = arith.constant 5.000000e-01 : f32
    %124 = vector.broadcast %cst_17 : f32 to vector<4x256xf32>
    %125 = arith.mulf %124, %123 : vector<4x256xf32>
    %cst_18 = arith.constant 5.000000e-01 : f32
    %126 = vector.broadcast %cst_18 : f32 to vector<4x256xf32>
    %127 = arith.addf %125, %126 : vector<4x256xf32>
    %c0_19 = arith.constant 0 : index
    %c0_20 = arith.constant 0 : index
    %c0_21 = arith.constant 0 : index
    %128 = vector.load %arg5[%c0_19, %c0_20, %c0_21] : memref<1x4x256xf32, #tpu.memory_space<vmem>>, vector<1x4x256xf32>
    %129 = vector.shape_cast %128 : vector<1x4x256xf32> to vector<4x256xf32>
    %130 = vector.shape_cast %127 : vector<4x256xf32> to vector<1x4x256xf32>
    tpu.vector_store %arg5[%c0_19, %c0_20, %c0_21], %130 {strides = array<i32>} : memref<1x4x256xf32, #tpu.memory_space<vmem>>, vector<1x4x256xf32>,
    return
  }
  func.func @transform_0(%arg0: i32, %arg1: i32) -> (i32, i32, i32) {
    %c0_i32 = arith.constant 0 : i32
    %c0_i32_0 = arith.constant 0 : i32
    return %arg0, %c0_i32, %arg1 : i32, i32, i32
  }
  func.func @transform_1(%arg0: i32, %arg1: i32) -> (i32, i32, i32) {
    %c0_i32 = arith.constant 0 : i32
    %c0_i32_0 = arith.constant 0 : i32
    return %arg0, %c0_i32, %arg1 : i32, i32, i32
  }
  func.func @transform_2(%arg0: i32, %arg1: i32) -> (i32, i32) {
    %c0_i32 = arith.constant 0 : i32
    %c0_i32_0 = arith.constant 0 : i32
    %c0_i32_1 = arith.constant 0 : i32
    return %c0_i32, %c0_i32_0 : i32, i32
  }
  func.func @transform_3(%arg0: i32, %arg1: i32) -> (i32, i32, i32) {
    %c0_i32 = arith.constant 0 : i32
    %c0_i32_0 = arith.constant 0 : i32
    return %arg0, %c0_i32, %arg1 : i32, i32, i32
  }
}

</mosaic_0001>

<bundles_post_ra>
// kernel: tpu_custom_call.1
= control target key start
LH: loop header
LB: loop body
LE: loop exit
PB: predicated region body
PF: predicated region fallthrough
CT: control target
= control target key end

     0   :  { %8 = vsyncpa [#allocation3], 0  ;;  %s1405_s0 = inlined_call_operand.hbm [shape: f32[2,4,256], index: 0, kind: input, shape index: {}]   ;;  %s1406_s1 = inlined_call_operand.hbm [shape: f32[2,4,256], index: 1, kind: input, shape index: {}]   ;;  %s1407_s2 = inlined_call_operand.vmem [shape: f32[4,4], index: 2, kind: input, shape index: {}]   ;;  %s1408_s3 = inlined_call_operand.hbm [shape: f32[2,4,256], index: 3, kind: output, shape index: {}]  }
   0x1   :  { %10 = vsyncpa [#allocation3 + $0x1], 0 }
   0x2   :  { %11 = vsyncpa [#allocation6], 0 }
   0x3   :  { %13 = vsyncpa [#allocation6 + $0x1], 0 }
   0x4   :  { %14 = vsyncpa [#allocation4], 0 }
   0x5   :  { %16 = vsyncpa [#allocation4 + $0x1], 0  ;;  %s1057_s12 = smov 0   ;;  %s1059_s13 = smov 0  }
   0x6   :  { %s1061_s14 = smov 0   ;;  %s1063_s15 = smov 0  }
   0x7   :  { %s1065_s16 = smov 0   ;;  %s1067_s17 = smov 0  }
   0x8 LB: > { %s784_s18 = sadd.s32 4294967295, %s1028_s17   ;;  %s785_s19 = sadd.s32 4294967294, %s1028_s17   ;;  %s1028_s17 = sphi %s1067_s17, %s22_s17   ;;  %s1024_s16 = sphi %s1065_s16, %s1428_s16   ;;  %s1020_s15 = sphi %s1063_s15, %s1427_s15   ;;  %s1016_s14 = sphi %s1061_s14, %s1426_s14   ;;  %s1012_s13 = sphi %s1059_s13, %s1425_s13   ;;  %s1008_s12 = sphi %s1057_s12, %s1424_s12  }
   0x9   : > { %s34_s20 = sadd.s32 1, %s1024_s16  ;;  %s43_s21 = sadd.s32 1, %s1016_s14 }
   0xa   : > { %p36_p0 = scmp.ge.s32.totalorder %s34_s20, 2  ;;  %p50_p1 = scmp.ne.s32.totalorder %s1016_s14, %s1012_s13 }
   0xb   : > { %p51_p2 = scmp.eq.s32.totalorder %s1028_s17, 0  ;;  %p56_p3 = scmp.ne.s32.totalorder %s1012_s13, %s1008_s12 }
   0xc   : > { %s1430_s20 = smov (%p36_p0, %s34_s20), 0  ;;  %p57_p5 = scmp.eq.s32.totalorder %s784_s18, 0 }
   0xd   : > { %p1098_p4 = por %p51_p2, %p50_p1  ;;  %s38_s23 = ssub.s32 %s1024_s16, %s1430_s20 }
   0xe   : > { %p131_p6 = scmp.eq.s32.totalorder %s784_s18, 1  ;;  %p41_p7 = scmp.eq.s32.totalorder %s38_s23, 0 }
   0xf   : > { %p1104_p8 = por %p57_p5, %p56_p3  ;;  %p137_p10 = scmp.eq.s32.totalorder %s785_s19, 1 }
  0x10   : > { %p1108_p9 = por %p131_p6, %p50_p1  ;;  %p823_p13 = scmp.lt.s32.totalorder %s1028_s17, 2 }
  0x11   : > { %s1412_s24 = scalar_select %p1104_p8, 1, 0 }
  0x12   : > { %s1413_s25 = scalar_select %p1108_p9, 1, 0 }
  0x13   : > { %s1113_s26 = scalar_select %p41_p7, %s1016_s14, %s43_s21  }
  0x14   : > { %p1115_p11 = por %p137_p10, %p56_p3  ;;  %s1122_s28 = sand.u32 1, %s1016_s14  }
  0x15   : > { %s788_s29 = sshll.u32 %s1122_s28, 3  ;;  %s803_s30 = sshll.u32 %s1024_s16, 7 }
  0x16   : > { %s1414_s27 = scalar_select %p1115_p11, 1, 0 }
  0x17   : > { %s1131_s6 = scalar_lea.hbm %s1405_s0, %s803_s30  ;;  %s164_s7 = scalar_lea.vmem [#allocation2], %s788_s29 }
  0x18   : > { %s174_s8 = sshll.u32 %s164_s7, 4  ;;  %p1139_p0 = pnand %p823_p13, %p1098_p4  ;;  %s1135_s8 = int_to_ptr.vmem [resolvable:$true] %s174_s8 }
  0x19   : > { %s161_s10 = scalar_lea.sflag [#allocation3], %s1122_s28  ;;  %s882_s11 = scalar_lea.hbm %s1131_s6, 128 }
  0x1a   : > { %p883_p3 = scmp.ne.s32.totalorder %s1131_s6, %s882_s11  ;;  %p884_p5 = pneg %p1139_p0 }
  0x1b   : > { %s887_s21 = scalar_lea.hbm %s1405_s0, 256  ;;  %p888_p4 = scmp.lt.u32.totalorder %s1131_s6, %s1405_s0 }
  0x1c   : > { %p885_p6 = pnand %p884_p5, %p883_p3  ;;  %p889_p10 = scmp.lt.u32.totalorder %s887_s21, %s882_s11 }
  0x1d   : > { %p891_p12 = scmp.lt.u32.totalorder %s882_s11, %s1131_s6 }
  0x1e   : > { %p886_p7 = pneg %p885_p6  ;;  %p890_p13 = por %p889_p10, %p888_p4 }
  0x20   : > { %p892_p1 = por %p891_p12, %p890_p13 }
  0x22   : > { %p893_p2 = pnand %p892_p1, %p886_p7 }
  0x24   : > { %896 = shalt.err (!%p893_p2)
}
  0x25   : > { %s897_s4 = scalar_lea.vmem %s1135_s8, 128  ;;  %s1030_s5 = smov [#allocation2]  }
  0x26   : > { %p898_p3 = scmp.ne.s32.totalorder %s1135_s8, %s897_s4  ;;  %s902_s7 = sshll.u32 %s1030_s5, 4  ;;  %s903_s7 = int_to_ptr.vmem [resolvable:$false] %s902_s7 }
  0x27   : > { %s904_s18 = scalar_lea.vmem %s903_s7, 256  ;;  %p905_p9 = scmp.lt.s32.totalorder %s1135_s8, %s903_s7 }
  0x28   : > { %p900_p6 = pnand %p898_p3, %p884_p5  ;;  %p906_p4 = scmp.lt.s32.totalorder %s904_s18, %s897_s4 }
  0x2a   : > { %p901_p11 = pneg %p900_p6  ;;  %p907_p10 = por %p906_p4, %p905_p9 }
  0x2c   : > { %p908_p12 = pnand %p907_p10, %p901_p11 }
  0x2e   : > { %911 = shalt.err (!%p908_p12)
}
  0x2f   : > { %815 = dma.hbm_to_vmem [thread:$0]  (!%p1139_p0), %s1131_s6, 128, %s1135_s8, %s161_s10  }
  0x30   : > { %p1416_p1 = scmp.lt.s32.totalorder %s1028_s17, 3  ;;  %p1417_p2 = scmp.ge.s32.totalorder %s1028_s17, 1 }
  0x31   : > { %s1184_s22 = scalar_lea.hbm %s1406_s1, %s803_s30  ;;  %s185_s23 = scalar_lea.vmem [#allocation5], %s788_s29 }
  0x32   : > { %p1175_p7 = pnand %p1417_p2, %p1416_p1  ;;  %s195_s4 = sshll.u32 %s185_s23, 4  ;;  %s196_s4 = int_to_ptr.vmem [resolvable:$true] %s195_s4 }
  0x33   : > { %s182_s6 = scalar_lea.sflag [#allocation6], %s1122_s28  ;;  %s912_s8 = scalar_lea.hbm %s1184_s22, 128 }
  0x34   : > { %s1418_s11 = scalar_select %p1175_p7, 1, 0 }
  0x35   : > { %p913_p9 = scmp.ne.s32.totalorder %s1184_s22, %s912_s8  ;;  %s917_s30 = scalar_lea.hbm %s1406_s1, 256 }
  0x36   : > { %p918_p3 = scmp.lt.u32.totalorder %s1184_s22, %s1406_s1  ;;  %p919_p6 = scmp.lt.u32.totalorder %s917_s30, %s912_s8 }
  0x37   : > { %p915_p11 = pnand %p913_p9, %p884_p5  ;;  %p921_p10 = scmp.lt.u32.totalorder %s912_s8, %s1184_s22 }
  0x38   : > { %p920_p4 = por %p919_p6, %p918_p3 }
  0x39   : > { %p916_p13 = pneg %p915_p11 }
  0x3a   : > { %p922_p12 = por %p921_p10, %p920_p4 }
  0x3c   : > { %p923_p1 = pnand %p922_p12, %p916_p13 }
  0x3e   : > { %926 = shalt.err (!%p923_p1)
}
  0x3f   : > { %s927_s28 = scalar_lea.vmem %s196_s4, 128  ;;  %s1031_s29 = smov [#allocation5]  }
  0x40   : > { %p928_p2 = scmp.ne.s32.totalorder %s196_s4, %s927_s28  ;;  %s932_s19 = sshll.u32 %s1031_s29, 4  ;;  %s933_s19 = int_to_ptr.vmem [resolvable:$false] %s932_s19 }
  0x41   : > { %s934_s21 = scalar_lea.vmem %s933_s19, 256  ;;  %p935_p8 = scmp.lt.s32.totalorder %s196_s4, %s933_s19 }
  0x42   : > { %p930_p9 = pnand %p928_p2, %p884_p5  ;;  %p936_p7 = scmp.lt.s32.totalorder %s934_s21, %s927_s28 }
  0x44   : > { %p931_p11 = pneg %p930_p9  ;;  %p937_p3 = por %p936_p7, %p935_p8 }
  0x46   : > { %p938_p6 = pnand %p937_p3, %p931_p11 }
  0x48   : > { %941 = shalt.err (!%p938_p6)
}
  0x49   : > { %818 = dma.hbm_to_vmem [thread:$0]  (!%p1139_p0), %s1184_s22, 128, %s196_s4, %s182_s6  }
  0x4a   : > { %p1419_p13 = scmp.ne.s32.totalorder %s1418_s11, 0 }
  0x4b   : > { %s1211_s23 = sand.u32 (!%p1419_p13), 1, %s1012_s13   ;;  %p1420_p8 = scmp.ne.s32.totalorder (!%p1419_p13), %s1412_s24, 0 }
  0x4c   : > { %204 = sbr.rel (%p1419_p13) target bundleno = 308 (0x134), region = 32  ;;  %s1214_s8 = sshll.u32 (!%p1419_p13), %s1211_s23, 3 }
  0x4d   : > { %s207_s10 = scalar_lea.sflag (!%p1419_p13), [#allocation3], %s1211_s23  ;;  %s210_s5 = scalar_lea.vmem (!%p1419_p13), [#allocation2], %s1214_s8 }
  0x53   : > { %995 = dma.done.wait (%p1420_p8), %s207_s10, 128  }
  0x54   : > { %997 = vsyncadd (%p1420_p8), %s207_s10, 4294967168  ;;  %s216_s9 = scalar_lea.sflag [#allocation6], %s1211_s23  ;;  %s219_s11 = scalar_lea.vmem [#allocation5], %s1214_s8 }
  0x55   : > { %999 = dma.done.wait (%p1420_p8), %s216_s9, 128  }
  0x56   : > { %1001 = vsyncadd (%p1420_p8), %s216_s9, 4294967168  ;;  %v1032_v0 = vmov 0   ;;  %v1033_v1 = vmov 2   ;;  %v252_v2 = vld [vmem:[%s1407_s2] sm:$0xf]  ;;  %v1034_v3 = vmov 1   ;;  %v263_v7 = vlaneseq }
  0x57   : > { %877 = vset.pattern.permute.xlu0 %v1032_v0  ;;  %879 = vset.pattern.permute.xlu1 %v1033_v1  ;;  %v1035_v4 = vmov 3   ;;  %v250_v5 = vld [vmem:[%s210_s5] sm:$0xff]  ;;  %v251_v6 = vld [vmem:[%s219_s11] sm:$0xff]  ;;  %s805_s24 = sshll.u32 %s1020_s15, 7  ;;  %s246_s6 = scalar_lea.vmem [#allocation7], %s1214_s8 }
  0x58   : > { %259 = vperm.xlu0 %877, %v252_v2   ;;  %310 = vperm.xlu1 %879, %v252_v2   ;;  %v253_v8 = vmul.f32 1.8942208, %v250_v5  ;;  %v254_v9 = vmul.f32 0.32090786, %v251_v6  ;;  %v264_v10 = vshrl.u32 %v263_v7, 7  ;;  %s674_s30 = sshll.u32 %s246_s6, 4  ;;  %s1356_s28 = scalar_lea.hbm %s1408_s3, %s805_s24  ;;  %s1358_s30 = int_to_ptr.vmem [resolvable:$true] %s674_s30 }
  0x59   : > { %s658_s29 = scalar_lea.sflag [#allocation4], %s1211_s23  ;;  %s942_s19 = scalar_lea.vmem %s1358_s30, 128 }
  0x5a   : > { %v255_v11 = vadd.f32 %v254_v9, %v253_v8  ;;  %v1231_v12 = vsub.s32 0, %v264_v10  ;;  %v1233_v14 = vsub.s32 4, %v264_v10  ;;  %v1235_v15 = vsub.s32 1, %v264_v10  ;;  %p943_p0 = scmp.ne.s32.totalorder %s1358_s30, %s942_s19  ;;  %p1421_p5 = scmp.ne.s32.totalorder %s1413_s25, 0 }
  0x5b   : > { %v1237_v16 = vsub.s32 5, %v264_v10  ;;  %v1239_v17 = vsub.s32 2, %v264_v10  ;;  %v1241_v18 = vsub.s32 6, %v264_v10  ;;  %v1243_v19 = vsub.s32 3, %v264_v10  ;;  %s1036_s15 = smov [#allocation7]  }
  0x5c   : > { %878 = vset.pattern.permute.xlu0 %v1034_v3  ;;  %880 = vset.pattern.permute.xlu1 %v1035_v4  ;;  %v256_v13 = vadd.f32 -0.9471104, %v255_v11  ;;  %v1245_v20 = vsub.s32 7, %v264_v10  ;;  %p944_p7 = pnand %p943_p0, %p1421_p5  ;;  %s946_s21 = sshll.u32 %s1036_s15, 4  ;;  %s947_s21 = int_to_ptr.vmem [resolvable:$false] %s946_s21 }
  0x5d   : > { %284 = vperm.xlu0 %878, %v252_v2   ;;  %336 = vperm.xlu1 %880, %v252_v2   ;;  %s948_s8 = scalar_lea.vmem %s947_s21, 256  ;;  %p949_p10 = scmp.lt.s32.totalorder %s1358_s30, %s947_s21 }
  0x5e   : > { %v266_v21 = vrot.slane %v256_v13, %v1231_v12  ;;  %v270_v22 = vrot.slane %v256_v13, %v1233_v14  ;;  %v290_v23 = vrot.slane %v256_v13, %v1235_v15  ;;  %v294_v24 = vrot.slane %v256_v13, %v1237_v16  ;;  %p945_p4 = pneg %p944_p7  ;;  %p950_p12 = scmp.lt.s32.totalorder %s948_s8, %s942_s19 }
  0x5f   : > { %v316_v25 = vrot.slane %v256_v13, %v1239_v17  ;;  %v320_v26 = vrot.slane %v256_v13, %v1241_v18  ;;  %v342_v29 = vrot.slane %v256_v13, %v1243_v19  ;;  %v346_v30 = vrot.slane %v256_v13, %v1245_v20 }
  0x60   : > { %v276_v31 = vrot.slane %v266_v21, %v1231_v12  ;;  %v280_v32 = vrot.slane %v270_v22, %v1231_v12  ;;  %v300_v33 = vrot.slane %v290_v23, %v1235_v15  ;;  %v304_v34 = vrot.slane %v294_v24, %v1235_v15  ;;  %p951_p1 = por %p950_p12, %p949_p10 }
  0x61   : > { %881 = vset.pattern.permute.xlu0 %v1035_v4  ;;  %v326_v35 = vrot.slane %v316_v25, %v1239_v17  ;;  %v330_v36 = vrot.slane %v320_v26, %v1239_v17  ;;  %v352_v37 = vrot.slane %v342_v29, %v1243_v19  ;;  %v356_v38 = vrot.slane %v346_v30, %v1243_v19 }
  0x62   : > { %v361_v55 = vmul.f32 1.0231991, %v256_v13  ;;  %p952_p2 = pnand %p951_p1, %p945_p4 }
  0xd7   : > { %v1253_v27 = vpop.permute.xlu0 %259  ;;  %v1255_v28 = vpop.permute.xlu1 %310 }
  0xd8   : > { %v281_v41 = vmul.f32 %v276_v31, %v1253_v27  ;;  %v282_v42 = vmul.f32 %v280_v32, %v1253_v27  ;;  %v331_v45 = vmul.f32 %v326_v35, %v1255_v28  ;;  %v332_v46 = vmul.f32 %v330_v36, %v1255_v28 }
  0xdc   : > { %v1267_v39 = vpop.permute.xlu0 %284  ;;  %v1269_v40 = vpop.permute.xlu1 %336 }
  0xdd   : > { %v305_v43 = vmul.f32 %v300_v33, %v1267_v39  ;;  %v306_v44 = vmul.f32 %v304_v34, %v1267_v39  ;;  %v357_v49 = vmul.f32 %v352_v37, %v1269_v40  ;;  %v358_v50 = vmul.f32 %v356_v38, %v1269_v40 }
  0xdf   : > { %v307_v47 = vadd.f32 %v305_v43, %v281_v41  ;;  %v308_v48 = vadd.f32 %v306_v44, %v282_v42 }
  0xe1   : > { %v333_v51 = vadd.f32 %v331_v45, %v307_v47  ;;  %v334_v52 = vadd.f32 %v332_v46, %v308_v48 }
  0xe3   : > { %v359_v53 = vadd.f32 %v357_v49, %v333_v51  ;;  %v360_v54 = vadd.f32 %v358_v50, %v334_v52 }
  0xe5   : > { %v362_v56 = vmul.f32 -0.08161572, %v359_v53  ;;  %v363_v57 = vmul.f32 -0.08161572, %v360_v54 }
  0xe7   : > { %v366_v58 = vcombine.low %v362_v56, %v363_v57 }
  0xe9   : > { %v368_v59 = vadd.f32 %v366_v58, %v361_v55 }
  0xeb   : > { %v373_v60 = vrot.slane %v368_v59, %v1231_v12  ;;  %v377_v61 = vrot.slane %v368_v59, %v1233_v14  ;;  %v393_v62 = vrot.slane %v368_v59, %v1235_v15  ;;  %v397_v63 = vrot.slane %v368_v59, %v1237_v16 }
  0xec   : > { %v415_v0 = vrot.slane %v368_v59, %v1239_v17  ;;  %v419_v1 = vrot.slane %v368_v59, %v1241_v18  ;;  %v437_v2 = vrot.slane %v368_v59, %v1243_v19  ;;  %v441_v3 = vrot.slane %v368_v59, %v1245_v20 }
  0xed   : > { %v383_v4 = vrot.slane %v373_v60, %v1231_v12  ;;  %v387_v5 = vrot.slane %v377_v61, %v1231_v12  ;;  %v403_v6 = vrot.slane %v393_v62, %v1235_v15  ;;  %v407_v7 = vrot.slane %v397_v63, %v1235_v15 }
  0xee   : > { %v425_v8 = vrot.slane %v415_v0, %v1239_v17  ;;  %v429_v9 = vrot.slane %v419_v1, %v1239_v17  ;;  %v447_v10 = vrot.slane %v437_v2, %v1243_v19  ;;  %v451_v11 = vrot.slane %v441_v3, %v1243_v19 }
  0xef   : > { %v388_v13 = vmul.f32 %v383_v4, %v1253_v27  ;;  %v389_v21 = vmul.f32 %v387_v5, %v1253_v27  ;;  %v408_v22 = vmul.f32 %v403_v6, %v1267_v39  ;;  %v409_v23 = vmul.f32 %v407_v7, %v1267_v39 }
  0xf0   : > { %v430_v26 = vmul.f32 %v425_v8, %v1255_v28  ;;  %v431_v29 = vmul.f32 %v429_v9, %v1255_v28  ;;  %v452_v32 = vmul.f32 %v447_v10, %v1269_v40  ;;  %v453_v33 = vmul.f32 %v451_v11, %v1269_v40 }
  0xf1   : > { %v410_v24 = vadd.f32 %v408_v22, %v388_v13  ;;  %v411_v25 = vadd.f32 %v409_v23, %v389_v21  ;;  %v456_v38 = vmul.f32 1.0162821, %v368_v59 }
  0xf3   : > { %v432_v30 = vadd.f32 %v430_v26, %v410_v24  ;;  %v433_v31 = vadd.f32 %v431_v29, %v411_v25 }
  0xf5   : > { %v454_v34 = vadd.f32 %v452_v32, %v432_v30  ;;  %v455_v35 = vadd.f32 %v453_v33, %v433_v31 }
  0xf7   : > { %v457_v36 = vmul.f32 -0.07740923, %v454_v34  ;;  %v458_v37 = vmul.f32 -0.07740923, %v455_v35 }
  0xf9   : > { %v461_v41 = vcombine.low %v457_v36, %v458_v37 }
  0xfb   : > { %v463_v42 = vadd.f32 %v461_v41, %v456_v38 }
  0xfd   : > { %v468_v43 = vrot.slane %v463_v42, %v1231_v12  ;;  %v472_v44 = vrot.slane %v463_v42, %v1233_v14  ;;  %v488_v45 = vrot.slane %v463_v42, %v1235_v15  ;;  %v492_v46 = vrot.slane %v463_v42, %v1237_v16 }
  0xfe   : > { %v510_v47 = vrot.slane %v463_v42, %v1239_v17  ;;  %v514_v48 = vrot.slane %v463_v42, %v1241_v18  ;;  %v532_v49 = vrot.slane %v463_v42, %v1243_v19  ;;  %v536_v50 = vrot.slane %v463_v42, %v1245_v20 }
  0xff   : > { %v478_v51 = vrot.slane %v468_v43, %v1231_v12  ;;  %v482_v52 = vrot.slane %v472_v44, %v1231_v12  ;;  %v498_v53 = vrot.slane %v488_v45, %v1235_v15  ;;  %v502_v54 = vrot.slane %v492_v46, %v1235_v15 }
 0x100   : > { %v520_v55 = vrot.slane %v510_v47, %v1239_v17  ;;  %v524_v56 = vrot.slane %v514_v48, %v1239_v17  ;;  %v542_v57 = vrot.slane %v532_v49, %v1243_v19  ;;  %v546_v58 = vrot.slane %v536_v50, %v1243_v19 }
 0x101   : > { %v483_v59 = vmul.f32 %v478_v51, %v1253_v27  ;;  %v484_v60 = vmul.f32 %v482_v52, %v1253_v27  ;;  %v503_v61 = vmul.f32 %v498_v53, %v1267_v39  ;;  %v504_v62 = vmul.f32 %v502_v54, %v1267_v39 }
 0x102   : > { %v525_v1 = vmul.f32 %v520_v55, %v1255_v28  ;;  %v526_v2 = vmul.f32 %v524_v56, %v1255_v28  ;;  %v547_v5 = vmul.f32 %v542_v57, %v1269_v40  ;;  %v548_v6 = vmul.f32 %v546_v58, %v1269_v40 }
 0x103   : > { %v505_v63 = vadd.f32 %v503_v61, %v483_v59  ;;  %v506_v0 = vadd.f32 %v504_v62, %v484_v60  ;;  %v551_v11 = vmul.f32 1.0107743, %v463_v42 }
 0x105   : > { %v527_v3 = vadd.f32 %v525_v1, %v505_v63  ;;  %v528_v4 = vadd.f32 %v526_v2, %v506_v0 }
 0x107   : > { %v549_v7 = vadd.f32 %v547_v5, %v527_v3  ;;  %v550_v8 = vadd.f32 %v548_v6, %v528_v4 }
 0x109   : > { %v552_v9 = vmul.f32 -0.08016123, %v549_v7  ;;  %v553_v10 = vmul.f32 -0.08016123, %v550_v8 }
 0x10b   : > { %v556_v13 = vcombine.low %v552_v9, %v553_v10 }
 0x10d   : > { %v558_v21 = vadd.f32 %v556_v13, %v551_v11 }
 0x10f   : > { %v627_v22 = vrot.slane %v558_v21, %v1243_v19  ;;  %v631_v23 = vrot.slane %v558_v21, %v1245_v20  ;;  %v563_v24 = vrot.slane %v558_v21, %v1231_v12  ;;  %v567_v25 = vrot.slane %v558_v21, %v1233_v14 }
 0x110   : > { %v583_v26 = vrot.slane %v558_v21, %v1235_v15  ;;  %v587_v29 = vrot.slane %v558_v21, %v1237_v16  ;;  %v605_v30 = vrot.slane %v558_v21, %v1239_v17  ;;  %v609_v31 = vrot.slane %v558_v21, %v1241_v18 }
 0x111   : > { %v573_v32 = vrot.slane %v563_v24, %v1231_v12  ;;  %v577_v33 = vrot.slane %v567_v25, %v1231_v12  ;;  %v637_v37 = vrot.slane %v627_v22, %v1243_v19  ;;  %v641_v18 = vrot.slane %v631_v23, %v1243_v19 }
 0x112   : > { %v593_v34 = vrot.slane %v583_v26, %v1235_v15  ;;  %v597_v20 = vrot.slane %v587_v29, %v1235_v15  ;;  %v615_v35 = vrot.slane %v605_v30, %v1239_v17  ;;  %v619_v14 = vrot.slane %v609_v31, %v1239_v17 }
 0x113   : > { %v578_v36 = vmul.f32 %v573_v32, %v1253_v27  ;;  %v579_v16 = vmul.f32 %v577_v33, %v1253_v27  ;;  %v642_v43 = vmul.f32 %v637_v37, %v1269_v40  ;;  %v643_v27 = vmul.f32 %v641_v18, %v1269_v40 }
 0x114   : > { %v598_v38 = vmul.f32 %v593_v34, %v1267_v39  ;;  %v599_v12 = vmul.f32 %v597_v20, %v1267_v39  ;;  %v620_v42 = vmul.f32 %v615_v35, %v1255_v28  ;;  %v621_v17 = vmul.f32 %v619_v14, %v1255_v28 }
 0x115   : > { %v646_v48 = vmul.f32 1.0045482, %v558_v21 }
 0x116   : > { %v600_v41 = vadd.f32 %v598_v38, %v578_v36  ;;  %v601_v15 = vadd.f32 %v599_v12, %v579_v16 }
 0x118   : > { %v622_v44 = vadd.f32 %v620_v42, %v600_v41  ;;  %v623_v45 = vadd.f32 %v621_v17, %v601_v15 }
 0x11a   : > { %v644_v19 = vadd.f32 %v642_v43, %v622_v44  ;;  %v645_v46 = vadd.f32 %v643_v27, %v623_v45 }
 0x11c   : > { %v647_v47 = vmul.f32 -0.09548381, %v644_v19  ;;  %v648_v39 = vmul.f32 -0.09548381, %v645_v46 }
 0x11e   : > { %v651_v49 = vcombine.low %v647_v47, %v648_v39 }
 0x120   : > { %v653_v50 = vadd.f32 %v651_v49, %v646_v48 }
 0x122   : > { %v654_v51 = vmul.f32 0.5, %v653_v50 }
 0x124   : > { %v655_v28 = vadd.f32 0.5, %v654_v51 }
 0x126   : > { %656 = vst [vmem:[%s246_s6] sm:$0xff] %v655_v28 }
 0x127   : > { %955 = shalt.err (!%p952_p2)
}
 0x128   : > { %s956_s23 = scalar_lea.hbm %s1356_s28, 128  ;;  %s960_s9 = scalar_lea.hbm %s1408_s3, 256 }
 0x129   : > { %p957_p9 = scmp.ne.s32.totalorder %s1356_s28, %s956_s23  ;;  %p961_p6 = scmp.lt.u32.totalorder %s1356_s28, %s1408_s3 }
 0x12a   : > { %p962_p13 = scmp.lt.u32.totalorder %s960_s9, %s956_s23  ;;  %p964_p0 = scmp.lt.u32.totalorder %s956_s23, %s1356_s28 }
 0x12b   : > { %p958_p11 = pnand %p957_p9, %p1421_p5 }
 0x12c   : > { %p963_p8 = por %p962_p13, %p961_p6 }
 0x12d   : > { %p959_p3 = pneg %p958_p11 }
 0x12e   : > { %p965_p7 = por %p964_p0, %p963_p8 }
 0x130   : > { %p966_p4 = pnand %p965_p7, %p959_p3 }
 0x132   : > { %969 = shalt.err (!%p966_p4)
}
 0x133   : > { %810 = dma.vmem_to_hbm [thread:$0]  (%p1421_p5), %s1358_s30, 128, %s1356_s28, %s658_s29  }
 0x134 PF: > { %s686_s4 = sand.u32 1, %s1008_s12   ;;  %p1422_p10 = scmp.ne.s32.totalorder %s1414_s27, 0 }
 0x135   : > { %p1423_p12 = scmp.ge.s32.totalorder %s1028_s17, 2  ;;  %s687_s24 = scalar_lea.sflag [#allocation4], %s686_s4 }
 0x137   : > { %p820_p1 = pnand %p1423_p12, %p1422_p10 }
 0x139   : > { %1003 = dma.done.wait (!%p820_p1), %s687_s24, 128  }
 0x13a   : > { %1005 = vsyncadd (!%p820_p1), %s687_s24, 4294967168  ;;  %s22_s17 = sadd.s32 1, %s1028_s17   ;;  %s1424_s12 = smov %s1012_s13 }
 0x13b   : > { %p19_p2 = scmp.ge.s32.totalorder %s22_s17, 4   ;;  %s1425_s13 = smov %s1016_s14 }
 0x13c   : > { %s1426_s14 = smov %s1113_s26  ;;  %s1427_s15 = smov %s1024_s16 }
 0x13d   : > { %s1428_s16 = smov %s1430_s20  ;;  %21 = sbr.rel (!%p19_p2) target bundleno = 8 (0x8), region = 90 }
 0x144   :  { %692 = vsyncpa [#allocation3], 1 }
 0x145   :  { %694 = vsyncpa [#allocation3 + $0x1], 1 }
 0x146   :  { %695 = vsyncpa [#allocation6], 1 }
 0x147   :  { %697 = vsyncpa [#allocation6 + $0x1], 1 }
 0x148   :  { %698 = vsyncpa [#allocation4], 1 }
 0x149   :  { %700 = vsyncpa [#allocation4 + $0x1], 1 }

</bundles_post_ra>
